<compile_context>
chip_gen: v5e
topology: v5e:2x2
jax: 0.10.0
libtpu: 0.0.40
codegen_flags: <defaults>
</compile_context>

<pallas_src>
import functools

import jax
import jax.numpy as jnp
from jax import lax
from jax.experimental import pallas as pl
from jax.experimental.pallas import tpu as pltpu


def _round_up(n, m):
    return ((n + m - 1) // m) * m


def _row_inv_norm_kernel(v_ref, o_ref, *, eps, scale):
    # Per-row scale / max(||v||, eps).  Elementwise math kept in f32 (v5e VPU has
    # no bf16); rsqrt goes to the EUP.
    v = v_ref[...].astype(jnp.float32)                     # (rows, H)
    sumsq = jnp.sum(v * v, axis=-1, keepdims=True)         # (rows, 1)
    o_ref[...] = lax.rsqrt(jnp.maximum(sumsq, eps * eps)) * scale


def _cosine_sim_kernel(x_ref, y_ref, xin_ref, yin_ref, o_ref):
    # All pairwise dot products: contract last dims directly so Mosaic feeds the
    # MXU without transposing/relayouting the y tile.  Operands stay in their
    # native dtype (bf16 inputs hit the fast MXU path); accumulate in f32.
    dots = lax.dot_general(
        x_ref[...], y_ref[...],
        dimension_numbers=(((1,), (1,)), ((), ())),
        preferred_element_type=jnp.float32,
    )                                                      # (tm, tn) f32
    # Epilogue: two broadcast multiplies; 1/temp already folded into x inv-norm.
    scaled = dots * xin_ref[...]                           # (tm, 1) broadcast
    o_ref[...] = (scaled * yin_ref[...]).astype(o_ref.dtype)   # (1, tn) broadcast


def _row_inv_norms(v, block_rows, *, eps, scale):
    rows, h = v.shape
    kernel = functools.partial(_row_inv_norm_kernel, eps=float(eps), scale=float(scale))
    return pl.pallas_call(
        kernel,
        out_shape=jax.ShapeDtypeStruct((rows, 1), jnp.float32),
        grid=(rows // block_rows,),
        in_specs=[pl.BlockSpec((block_rows, h), lambda i: (i, 0))],
        out_specs=pl.BlockSpec((block_rows, 1), lambda i: (i, 0)),
        compiler_params=pltpu.CompilerParams(dimension_semantics=("parallel",)),
    )(v)


def similarity(x, y, temp, eps=1e-8):
    """Cosine similarity along the last dim divided by temp.

    Accepts the SimCSE calling convention x=[B1,1,H], y=[1,B2,H] (or plain 2-D
    [B,H] inputs) and returns the [B1, B2] similarity matrix, matching
    torch.nn.CosineSimilarity(dim=-1)(x, y) / temp with broadcasting and the
    eps=1e-8 norm clamp.
    """
    if x.ndim == 3 and x.shape[1] == 1:
        x2 = x[:, 0, :]
    else:
        x2 = x.reshape(-1, x.shape[-1])
    if y.ndim == 3 and y.shape[0] == 1:
        y2 = y[0]
    else:
        y2 = y.reshape(-1, y.shape[-1])

    b1, h = x2.shape
    b2, h2 = y2.shape
    assert h == h2, (h, h2)

    # Tile sizes: M tile sublane-aligned (multiple of 8), N tile lane-dense
    # (multiple of 128 -> unmasked vst).  256 keeps the 256-wide MXU on v6e/v7x
    # full while staying far inside the v7x 32 MiB scoped-VMEM default
    # (~double-buffered 2*(256*H*dtype) inputs + 256*256*4B output).
    tm = min(256, _round_up(b1, 8))
    tn = min(256, _round_up(b2, 128))
    b1p = _round_up(b1, tm)
    b2p = _round_up(b2, tn)
    if b1p != b1:
        x2 = jnp.pad(x2, ((0, b1p - b1), (0, 0)))
    if b2p != b2:
        y2 = jnp.pad(y2, ((0, b2p - b2), (0, 0)))

    # Hoisted per-row inverse norms: computed once (not once per output tile).
    # 1/temp is folded into x's inv-norm.  Zero padded rows give finite 1/eps
    # inv-norms; their dots are zero and the padded region is sliced off below.
    x_inv = _row_inv_norms(x2, tm, eps=eps, scale=1.0 / float(temp))      # (b1p, 1)
    y_inv = _row_inv_norms(y2, tn, eps=eps, scale=1.0).reshape(1, b2p)    # (1, b2p)

    grid = (b1p // tm, b2p // tn)
    itemsize = jnp.dtype(x2.dtype).itemsize
    cost = pl.CostEstimate(
        flops=2 * b1p * b2p * h + 2 * b1p * b2p,
        transcendentals=0,
        bytes_accessed=(b1p * h * itemsize * grid[1]
                        + b2p * h * itemsize * grid[0]
                        + b1p * b2p * 4),
    )

    out = pl.pallas_call(
        _cosine_sim_kernel,
        out_shape=jax.ShapeDtypeStruct((b1p, b2p), jnp.float32),
        grid=grid,
        in_specs=[
            pl.BlockSpec((tm, h), lambda i, j: (i, 0)),   # x rows for this i
            pl.BlockSpec((tn, h), lambda i, j: (j, 0)),   # y rows for this j
            pl.BlockSpec((tm, 1), lambda i, j: (i, 0)),   # x inv-norms (w/ 1/temp)
            pl.BlockSpec((1, tn), lambda i, j: (0, j)),   # y inv-norms (row vector)
        ],
        out_specs=pl.BlockSpec((tm, tn), lambda i, j: (i, j)),
        compiler_params=pltpu.CompilerParams(
            dimension_semantics=("parallel", "parallel")),
        cost_estimate=cost,
    )(x2, y2, x_inv, y_inv)

    return out[:b1, :b2]


def _reference(x, y, temp, eps=1e-8):
    # Pure-JAX mirror of torch CosineSimilarity(dim=-1)(x, y) / temp with broadcasting.
    xb, yb = jnp.broadcast_arrays(x, y)
    num = jnp.sum(xb * yb, axis=-1)
    xn = jnp.maximum(jnp.linalg.norm(xb, axis=-1), eps)
    yn = jnp.maximum(jnp.linalg.norm(yb, axis=-1), eps)
    return num / (xn * yn) / temp


if __name__ == "__main__":
    temp = 0.05  # SimCSE default temperature (the module's only "parameter")
    B, H = 8, 32

    key = jax.random.PRNGKey(0)
    kx, ky = jax.random.split(key)
    z1 = jax.random.normal(kx, (B, H), dtype=jnp.float32)
    z2 = jax.random.normal(ky, (B, H), dtype=jnp.float32)

    # SimCSE calling convention: cos_sim(z1.unsqueeze(1), z2.unsqueeze(0))
    x = z1[:, None, :]   # (B, 1, H)
    y = z2[None, :, :]   # (1, B, H)

    out = similarity(x, y, temp)
    out = jax.block_until_ready(out)

    ref = _reference(x, y, temp)
    assert out.shape == (B, B), out.shape
    assert jnp.allclose(out, ref, atol=5e-4, rtol=5e-4), (
        float(jnp.max(jnp.abs(out - ref)))
    )
    print("KERNEL_OK")
</pallas_src>

<mosaic_0001>
module attributes {stable_mosaic.version = 11 : i64} {
  func.func @_row_inv_norm_kernel(%arg0: i32, %arg1: memref<8x32xf32, #tpu.memory_space<vmem>>, %arg2: memref<8x1xf32, #tpu.memory_space<vmem>>) attributes {dimension_semantics = [#tpu.dimension_semantics<parallel>], iteration_bounds = array<i64: 1>, scalar_prefetch = 0 : i64, scratch_operands = 0 : i64, tpu.core_type = #tpu.core_type<tc>, window_params = [{transform_indices = @transform_0, window_bounds = array<i64: 8, 32>}, {transform_indices = @transform_1, window_bounds = array<i64: 8, 1>}]} {
    %c0 = arith.constant 0 : index
    %c0_0 = arith.constant 0 : index
    %0 = vector.load %arg1[%c0, %c0_0] : memref<8x32xf32, #tpu.memory_space<vmem>>, vector<8x32xf32>
    %1 = arith.mulf %0, %0 : vector<8x32xf32>
    %cst = arith.constant dense<0.000000e+00> : vector<8xf32>
    %2 = vector.multi_reduction <add>, %1, %cst [1] : vector<8x32xf32> to vector<8xf32>
    %3 = vector.shape_cast %2 : vector<8xf32> to vector<8x1xf32>
    %cst_1 = arith.constant 1.000000e-16 : f32
    %4 = vector.broadcast %cst_1 : f32 to vector<8x1xf32>
    %5 = arith.maximumf %3, %4 : vector<8x1xf32>
    %6 = math.rsqrt %5 : vector<8x1xf32>
    %cst_2 = arith.constant 2.000000e+01 : f32
    %7 = vector.broadcast %cst_2 : f32 to vector<8x1xf32>
    %8 = arith.mulf %6, %7 : vector<8x1xf32>
    %c0_3 = arith.constant 0 : index
    %c0_4 = arith.constant 0 : index
    %9 = vector.load %arg2[%c0_3, %c0_4] : memref<8x1xf32, #tpu.memory_space<vmem>>, vector<8x1xf32>
    tpu.vector_store %arg2[%c0_3, %c0_4], %8 {strides = array<i32>} : memref<8x1xf32, #tpu.memory_space<vmem>>, vector<8x1xf32>,
    return
  }
  func.func @transform_0(%arg0: i32) -> (i32, i32) {
    %c0_i32 = arith.constant 0 : i32
    %c0_i32_0 = arith.constant 0 : i32
    return %arg0, %c0_i32 : i32, i32
  }
  func.func @transform_1(%arg0: i32) -> (i32, i32) {
    %c0_i32 = arith.constant 0 : i32
    %c0_i32_0 = arith.constant 0 : i32
    return %arg0, %c0_i32 : i32, i32
  }
}

</mosaic_0001>

<bundles_post_ra>
// kernel: tpu_custom_call.1
= control target key start
LH: loop header
LB: loop body
LE: loop exit
PB: predicated region body
PF: predicated region fallthrough
CT: control target
= control target key end

     0   :  { %6 = vsyncpa [#allocation3], 0  ;;  %s76_s9 = smov [#allocation2]   ;;  %s93_s0 = inlined_call_operand.hbm [shape: f32[8,32], index: 0, kind: input, shape index: {}]   ;;  %s94_s1 = inlined_call_operand.vmem [shape: f32[8,1], index: 1, kind: output, shape index: {}]  }
   0x1   :  { %s12_s8 = sshll.u32 %s93_s0, 4  ;;  %s14_s10 = sshll.u32 %s76_s9, 4  ;;  %s13_s8 = int_to_ptr.hbm [resolvable:$true] %s12_s8  ;;  %s15_s10 = int_to_ptr.vmem [resolvable:$true] %s14_s10 }
   0x2   :  { %17 = dma.hbm_to_vmem [thread:$0]  %s13_s8, 128, %s15_s10, [#allocation3]  }
   0x3   :  { %74 = dma.done.wait [#allocation3], 128  }
   0x4   :  { %75 = vsyncadd [#allocation3], 4294967168  ;;  %v22_v0 = vld [vmem:[#allocation2] sm:$0xff]  ;;  %vm24_vm0 = vcmask 261120   ;;  %vm40_vm4 = vcmask 7168  }
   0x5   :  { %v23_v1 = vmul.f32 %v22_v0, %v22_v0 }
   0x7   :  { %v25_v2 = vsel %vm24_vm0, %v23_v1, 0.0 }
   0x8   :  { %26 = vadd.xlane.f32.xlu0 %v25_v2 }
  0x7b   :  { %v27_v3 = vpop.xlane.xlu0 %26 }
  0x7c   :  { %v28_v4 = vmax.f32 %v27_v3, 1e-16 }
  0x7e   :  { %48 = vrsqrt.f32 %v28_v4  ;;  %vm35_vm2 = vweird.f32 %v28_v4 }
  0x84   :  { %v49_v5 = vpop.eup %48 }
  0x85   :  { %v30_v6 = vmul.f32 %v49_v5, %v28_v4  ;;  %vm36_vm1 = vweird.f32 %v49_v5 }
  0x86   :  { %vm37_vm3 = vmor %vm35_vm2, %vm36_vm1 }
  0x87   :  { %v31_v7 = vmul.f32 %v49_v5, %v30_v6 }
  0x89   :  { %v32_v8 = vmul.f32 0.5, %v31_v7 }
  0x8b   :  { %v33_v9 = vsub.f32 1.5, %v32_v8 }
  0x8d   :  { %v34_v10 = vmul.f32 %v49_v5, %v33_v9 }
  0x8f   :  { %v38_v11 = vsel %vm37_vm3, %v49_v5, %v34_v10 }
  0x90   :  { %v39_v12 = vmul.f32 20.0, %v38_v11 }
  0x92   :  { %41 = vst.msk [vmem:[%s94_s1] sm:$0xff] %vm40_vm4, %v39_v12 }
  0x93   :  { %46 = vsyncpa [#allocation3], 1 }

</bundles_post_ra>
